<compile_context>
chip_gen: v7x
topology: tpu7x:2x2x1
jax: 0.10.0
libtpu: 0.0.40
codegen_flags: <defaults>
</compile_context>

<pallas_src>
import functools

import jax
import jax.numpy as jnp
from jax.experimental import pallas as pl
from jax.experimental.pallas import tpu as pltpu


def _round_up(x, m):
    return (x + m - 1) // m * m


def mlp_kernel(x_ref,
               w1_ref, b1_ref,
               w2_ref, b2_ref,
               w3_ref, b3_ref,
               w4_ref, b4_ref,
               w5_ref, b5_ref,
               o_ref,
               *, out_dim):
    def dense_relu(h_f32, w_ref, b_ref):
        # bf16 operands on the MXU, f32 accumulation, f32 bias-add + ReLU (VPU).
        acc = jnp.dot(h_f32.astype(jnp.bfloat16), w_ref[...],
                      preferred_element_type=jnp.float32)
        return jnp.maximum(acc + b_ref[...], 0.0)

    h = dense_relu(x_ref[...], w1_ref, b1_ref)
    h = dense_relu(h, w2_ref, b2_ref)
    h = dense_relu(h, w3_ref, b3_ref)
    h = dense_relu(h, w4_ref, b4_ref)

    logits = jnp.dot(h.astype(jnp.bfloat16), w5_ref[...],
                     preferred_element_type=jnp.float32) + b5_ref[...]

    # sigmoid: exp + approximate reciprocal both live on the EUP slot.
    s = pl.reciprocal(1.0 + jnp.exp(-logits), approx=True)

    # softmax over the REAL output columns only (padded lanes masked to 0).
    # sigmoid output is in (0,1) -> exp cannot overflow, skip max-subtraction.
    lane = jax.lax.broadcasted_iota(jnp.int32, s.shape, dimension=1)
    e = jnp.where(lane < out_dim, jnp.exp(s), 0.0)
    denom = jnp.sum(e, axis=-1, keepdims=True)
    r = pl.reciprocal(denom, approx=True)
    r = r * (2.0 - denom * r)            # one Newton step -> exact-to-f32 row sums
    o_ref[...] = e * r


def base_model_forward(x, padded_params, output_dim):
    """x: [B, input_dim] f32; padded_params: list of (W bf16 [in_pad,out_pad], b f32 [1,out_pad])."""
    B, in_dim = x.shape
    out_pad = padded_params[-1][0].shape[1]

    # Batch tile: fill the MXU rows (up to 256) but never exceed B; keep it a
    # sublane multiple.  Pad B up to a tile multiple, slice afterwards.
    tile_b = 256 if B >= 256 else _round_up(B, 8)
    b_pad = _round_up(B, tile_b)
    if b_pad != B:
        x = jnp.pad(x, ((0, b_pad - B), (0, 0)))

    flat_args = [x]
    in_specs = [pl.BlockSpec((tile_b, in_dim), lambda i: (i, 0))]
    for w, b in padded_params:
        flat_args += [w, b]
        # Constant block index -> weights/biases are fetched once and stay
        # resident in VMEM across all batch-grid steps.
        in_specs += [pl.BlockSpec(w.shape, lambda i: (0, 0)),
                     pl.BlockSpec(b.shape, lambda i: (0, 0))]

    weight_bytes = sum(int(w.size) * w.dtype.itemsize + int(b.size) * b.dtype.itemsize
                       for w, b in padded_params)
    cost = pl.CostEstimate(
        flops=2 * b_pad * sum(int(w.shape[0]) * int(w.shape[1])
                              for w, _ in padded_params),
        transcendentals=3 * b_pad * out_pad,           # sigmoid exp, softmax exp, recips
        bytes_accessed=int(x.size) * 4 + b_pad * out_pad * 4 + weight_bytes,
    )

    out = pl.pallas_call(
        functools.partial(mlp_kernel, out_dim=output_dim),
        out_shape=jax.ShapeDtypeStruct((b_pad, out_pad), jnp.float32),
        grid=(b_pad // tile_b,),
        in_specs=in_specs,
        out_specs=pl.BlockSpec((tile_b, out_pad), lambda i: (i, 0)),
        compiler_params=pltpu.CompilerParams(
            dimension_semantics=("parallel",)),
        cost_estimate=cost,
    )(*flat_args)

    return out[:B, :output_dim]


def init_params(key, input_dim, output_dim):
    """PyTorch nn.Linear-style init: U(-1/sqrt(fan_in), 1/sqrt(fan_in)); W is [in, out]."""
    dims = [input_dim, 200, 100, 50, 25, output_dim]
    params = []
    for i in range(len(dims) - 1):
        fan_in, fan_out = dims[i], dims[i + 1]
        key, kw, kb = jax.random.split(key, 3)
        bound = 1.0 / (fan_in ** 0.5)
        w = jax.random.uniform(kw, (fan_in, fan_out), jnp.float32, -bound, bound)
        b = jax.random.uniform(kb, (fan_out,), jnp.float32, -bound, bound)
        params.append((w, b))
    return params


def pad_params(params):
    """Zero-pad feature dims to lane multiples of 128; store W as bf16, b as f32 [1, out_pad]."""
    padded = []
    prev_out_pad = params[0][0].shape[0]          # input_dim stays unpadded
    for w, b in params:
        fan_in, fan_out = w.shape
        out_pad = _round_up(fan_out, 128)
        wp = jnp.zeros((prev_out_pad, out_pad), jnp.float32).at[:fan_in, :fan_out].set(w)
        bp = jnp.zeros((1, out_pad), jnp.float32).at[0, :fan_out].set(b)
        padded.append((wp.astype(jnp.bfloat16), bp))
        prev_out_pad = out_pad
    return padded


def reference_forward(x, params):
    """Pure-JAX reference (f32 math, weights rounded through bf16 to match storage)."""
    def q(w):
        return w.astype(jnp.bfloat16).astype(jnp.float32)
    h = x
    for w, b in params[:-1]:
        h = jnp.maximum(h @ q(w) + b, 0.0)
    w, b = params[-1]
    s = jax.nn.sigmoid(h @ q(w) + b)
    return jax.nn.softmax(s, axis=-1)


if __name__ == "__main__":
    input_dim = 32
    output_dim = 10
    batch = 8

    key = jax.random.PRNGKey(0)
    key, kx = jax.random.split(key)
    x = jax.random.normal(kx, (batch, input_dim), jnp.float32)

    params = init_params(key, input_dim, output_dim)
    padded_params = pad_params(params)

    y = base_model_forward(x, padded_params, output_dim)
    jax.block_until_ready(y)

    # sanity: shape, softmax rows sum to 1, and agreement with a JAX reference
    assert y.shape == (batch, output_dim)
    row_sums = jnp.sum(y, axis=-1)
    assert bool(jnp.all(jnp.abs(row_sums - 1.0) < 1e-4)), row_sums
    y_ref = reference_forward(x, params)
    assert bool(jnp.all(jnp.abs(y - y_ref) < 2e-2)), jnp.max(jnp.abs(y - y_ref))

    print("KERNEL_OK")
</pallas_src>

<mosaic_0001>
module attributes {stable_mosaic.version = 11 : i64} {
  func.func @mlp_kernel(%arg0: i32, %arg1: memref<8x32xf32, #tpu.memory_space<vmem>>, %arg2: memref<32x256xbf16, #tpu.memory_space<vmem>>, %arg3: memref<1x256xf32, #tpu.memory_space<vmem>>, %arg4: memref<256x128xbf16, #tpu.memory_space<vmem>>, %arg5: memref<1x128xf32, #tpu.memory_space<vmem>>, %arg6: memref<128x128xbf16, #tpu.memory_space<vmem>>, %arg7: memref<1x128xf32, #tpu.memory_space<vmem>>, %arg8: memref<128x128xbf16, #tpu.memory_space<vmem>>, %arg9: memref<1x128xf32, #tpu.memory_space<vmem>>, %arg10: memref<128x128xbf16, #tpu.memory_space<vmem>>, %arg11: memref<1x128xf32, #tpu.memory_space<vmem>>, %arg12: memref<8x128xf32, #tpu.memory_space<vmem>>) attributes {dimension_semantics = [#tpu.dimension_semantics<parallel>], iteration_bounds = array<i64: 1>, scalar_prefetch = 0 : i64, scratch_operands = 0 : i64, tpu.core_type = #tpu.core_type<tc>, window_params = [{transform_indices = @transform_0, window_bounds = array<i64: 8, 32>}, {pipeline_mode = #tpu.pipeline_mode<synchronous>, transform_indices = @transform_1, window_bounds = array<i64: 32, 256>}, {pipeline_mode = #tpu.pipeline_mode<synchronous>, transform_indices = @transform_2, window_bounds = array<i64: 1, 256>}, {pipeline_mode = #tpu.pipeline_mode<synchronous>, transform_indices = @transform_3, window_bounds = array<i64: 256, 128>}, {pipeline_mode = #tpu.pipeline_mode<synchronous>, transform_indices = @transform_4, window_bounds = array<i64: 1, 128>}, {pipeline_mode = #tpu.pipeline_mode<synchronous>, transform_indices = @transform_5, window_bounds = array<i64: 128, 128>}, {pipeline_mode = #tpu.pipeline_mode<synchronous>, transform_indices = @transform_6, window_bounds = array<i64: 1, 128>}, {pipeline_mode = #tpu.pipeline_mode<synchronous>, transform_indices = @transform_7, window_bounds = array<i64: 128, 128>}, {pipeline_mode = #tpu.pipeline_mode<synchronous>, transform_indices = @transform_8, window_bounds = array<i64: 1, 128>}, {pipeline_mode = #tpu.pipeline_mode<synchronous>, transform_indices = @transform_9, window_bounds = array<i64: 128, 128>}, {pipeline_mode = #tpu.pipeline_mode<synchronous>, transform_indices = @transform_10, window_bounds = array<i64: 1, 128>}, {transform_indices = @transform_11, window_bounds = array<i64: 8, 128>}]} {
    %c0 = arith.constant 0 : index
    %c0_0 = arith.constant 0 : index
    %0 = vector.load %arg1[%c0, %c0_0] : memref<8x32xf32, #tpu.memory_space<vmem>>, vector<8x32xf32>
    %1 = arith.truncf %0 : vector<8x32xf32> to vector<8x32xbf16>
    %c0_1 = arith.constant 0 : index
    %c0_2 = arith.constant 0 : index
    %2 = vector.load %arg2[%c0_1, %c0_2] : memref<32x256xbf16, #tpu.memory_space<vmem>>, vector<32x256xbf16>
    %cst = arith.constant dense<0.000000e+00> : vector<8x256xf32>
    %3 = tpu.matmul %1, %2, %cst {dimension_numbers = #tpu.dot_dimension_numbers<[1], [0], [0], [1], [0, 0, 1, 1], [], []>} : vector<8x32xbf16>, vector<32x256xbf16>, vector<8x256xf32> -> vector<8x256xf32>
    %c0_3 = arith.constant 0 : index
    %c0_4 = arith.constant 0 : index
    %4 = vector.load %arg3[%c0_3, %c0_4] : memref<1x256xf32, #tpu.memory_space<vmem>>, vector<1x256xf32>
    %5 = vector.broadcast %4 : vector<1x256xf32> to vector<8x256xf32>
    %6 = arith.addf %3, %5 : vector<8x256xf32>
    %cst_5 = arith.constant 0.000000e+00 : f32
    %7 = vector.broadcast %cst_5 : f32 to vector<8x256xf32>
    %8 = arith.maximumf %6, %7 : vector<8x256xf32>
    %9 = arith.truncf %8 : vector<8x256xf32> to vector<8x256xbf16>
    %c0_6 = arith.constant 0 : index
    %c0_7 = arith.constant 0 : index
    %10 = vector.load %arg4[%c0_6, %c0_7] : memref<256x128xbf16, #tpu.memory_space<vmem>>, vector<256x128xbf16>
    %cst_8 = arith.constant dense<0.000000e+00> : vector<8x128xf32>
    %11 = tpu.matmul %9, %10, %cst_8 {dimension_numbers = #tpu.dot_dimension_numbers<[1], [0], [0], [1], [0, 0, 1, 1], [], []>} : vector<8x256xbf16>, vector<256x128xbf16>, vector<8x128xf32> -> vector<8x128xf32>
    %c0_9 = arith.constant 0 : index
    %c0_10 = arith.constant 0 : index
    %12 = vector.load %arg5[%c0_9, %c0_10] : memref<1x128xf32, #tpu.memory_space<vmem>>, vector<1x128xf32>
    %13 = vector.broadcast %12 : vector<1x128xf32> to vector<8x128xf32>
    %14 = arith.addf %11, %13 : vector<8x128xf32>
    %cst_11 = arith.constant 0.000000e+00 : f32
    %15 = vector.broadcast %cst_11 : f32 to vector<8x128xf32>
    %16 = arith.maximumf %14, %15 : vector<8x128xf32>
    %17 = arith.truncf %16 : vector<8x128xf32> to vector<8x128xbf16>
    %c0_12 = arith.constant 0 : index
    %c0_13 = arith.constant 0 : index
    %18 = vector.load %arg6[%c0_12, %c0_13] : memref<128x128xbf16, #tpu.memory_space<vmem>>, vector<128x128xbf16>
    %cst_14 = arith.constant dense<0.000000e+00> : vector<8x128xf32>
    %19 = tpu.matmul %17, %18, %cst_14 {dimension_numbers = #tpu.dot_dimension_numbers<[1], [0], [0], [1], [0, 0, 1, 1], [], []>} : vector<8x128xbf16>, vector<128x128xbf16>, vector<8x128xf32> -> vector<8x128xf32>
    %c0_15 = arith.constant 0 : index
    %c0_16 = arith.constant 0 : index
    %20 = vector.load %arg7[%c0_15, %c0_16] : memref<1x128xf32, #tpu.memory_space<vmem>>, vector<1x128xf32>
    %21 = vector.broadcast %20 : vector<1x128xf32> to vector<8x128xf32>
    %22 = arith.addf %19, %21 : vector<8x128xf32>
    %cst_17 = arith.constant 0.000000e+00 : f32
    %23 = vector.broadcast %cst_17 : f32 to vector<8x128xf32>
    %24 = arith.maximumf %22, %23 : vector<8x128xf32>
    %25 = arith.truncf %24 : vector<8x128xf32> to vector<8x128xbf16>
    %c0_18 = arith.constant 0 : index
    %c0_19 = arith.constant 0 : index
    %26 = vector.load %arg8[%c0_18, %c0_19] : memref<128x128xbf16, #tpu.memory_space<vmem>>, vector<128x128xbf16>
    %cst_20 = arith.constant dense<0.000000e+00> : vector<8x128xf32>
    %27 = tpu.matmul %25, %26, %cst_20 {dimension_numbers = #tpu.dot_dimension_numbers<[1], [0], [0], [1], [0, 0, 1, 1], [], []>} : vector<8x128xbf16>, vector<128x128xbf16>, vector<8x128xf32> -> vector<8x128xf32>
    %c0_21 = arith.constant 0 : index
    %c0_22 = arith.constant 0 : index
    %28 = vector.load %arg9[%c0_21, %c0_22] : memref<1x128xf32, #tpu.memory_space<vmem>>, vector<1x128xf32>
    %29 = vector.broadcast %28 : vector<1x128xf32> to vector<8x128xf32>
    %30 = arith.addf %27, %29 : vector<8x128xf32>
    %cst_23 = arith.constant 0.000000e+00 : f32
    %31 = vector.broadcast %cst_23 : f32 to vector<8x128xf32>
    %32 = arith.maximumf %30, %31 : vector<8x128xf32>
    %33 = arith.truncf %32 : vector<8x128xf32> to vector<8x128xbf16>
    %c0_24 = arith.constant 0 : index
    %c0_25 = arith.constant 0 : index
    %34 = vector.load %arg10[%c0_24, %c0_25] : memref<128x128xbf16, #tpu.memory_space<vmem>>, vector<128x128xbf16>
    %cst_26 = arith.constant dense<0.000000e+00> : vector<8x128xf32>
    %35 = tpu.matmul %33, %34, %cst_26 {dimension_numbers = #tpu.dot_dimension_numbers<[1], [0], [0], [1], [0, 0, 1, 1], [], []>} : vector<8x128xbf16>, vector<128x128xbf16>, vector<8x128xf32> -> vector<8x128xf32>
    %c0_27 = arith.constant 0 : index
    %c0_28 = arith.constant 0 : index
    %36 = vector.load %arg11[%c0_27, %c0_28] : memref<1x128xf32, #tpu.memory_space<vmem>>, vector<1x128xf32>
    %37 = vector.broadcast %36 : vector<1x128xf32> to vector<8x128xf32>
    %38 = arith.addf %35, %37 : vector<8x128xf32>
    %cst_29 = arith.constant 0.000000e+00 : f32
    %39 = vector.broadcast %cst_29 : f32 to vector<8x128xf32>
    %40 = arith.subf %39, %38 : vector<8x128xf32>
    %41 = math.exp %40 : vector<8x128xf32>
    %cst_30 = arith.constant 1.000000e+00 : f32
    %42 = vector.broadcast %cst_30 : f32 to vector<8x128xf32>
    %43 = arith.addf %42, %41 : vector<8x128xf32>
    %44 = tpu.reciprocal %43 {approx = true} : vector<8x128xf32> -> vector<8x128xf32>
    %45 = tpu.iota {dimensions = array<i32: 1>} : vector<8x128xi32>
    %c10_i32 = arith.constant 10 : i32
    %46 = vector.broadcast %c10_i32 : i32 to vector<8x128xi32>
    %47 = arith.cmpi slt, %45, %46 : vector<8x128xi32>
    %48 = math.exp %44 : vector<8x128xf32>
    %cst_31 = arith.constant 0.000000e+00 : f32
    %49 = vector.broadcast %cst_31 : f32 to vector<8x128xf32>
    %50 = arith.select %47, %48, %49 : vector<8x128xi1>, vector<8x128xf32>
    %cst_32 = arith.constant dense<0.000000e+00> : vector<8xf32>
    %51 = vector.multi_reduction <add>, %50, %cst_32 [1] : vector<8x128xf32> to vector<8xf32>
    %52 = vector.shape_cast %51 : vector<8xf32> to vector<8x1xf32>
    %53 = tpu.reciprocal %52 {approx = true} : vector<8x1xf32> -> vector<8x1xf32>
    %54 = arith.mulf %52, %53 : vector<8x1xf32>
    %cst_33 = arith.constant 2.000000e+00 : f32
    %55 = vector.broadcast %cst_33 : f32 to vector<8x1xf32>
    %56 = arith.subf %55, %54 : vector<8x1xf32>
    %57 = arith.mulf %53, %56 : vector<8x1xf32>
    %58 = vector.broadcast %57 : vector<8x1xf32> to vector<8x128xf32>
    %59 = arith.mulf %50, %58 : vector<8x128xf32>
    %c0_34 = arith.constant 0 : index
    %c0_35 = arith.constant 0 : index
    %60 = vector.load %arg12[%c0_34, %c0_35] : memref<8x128xf32, #tpu.memory_space<vmem>>, vector<8x128xf32>
    tpu.vector_store %arg12[%c0_34, %c0_35], %59 {strides = array<i32>} : memref<8x128xf32, #tpu.memory_space<vmem>>, vector<8x128xf32>,
    return
  }
  func.func @transform_0(%arg0: i32) -> (i32, i32) {
    %c0_i32 = arith.constant 0 : i32
    %c0_i32_0 = arith.constant 0 : i32
    return %arg0, %c0_i32 : i32, i32
  }
  func.func @transform_1(%arg0: i32) -> (i32, i32) {
    %c0_i32 = arith.constant 0 : i32
    %c0_i32_0 = arith.constant 0 : i32
    %c0_i32_1 = arith.constant 0 : i32
    return %c0_i32, %c0_i32_0 : i32, i32
  }
  func.func @transform_2(%arg0: i32) -> (i32, i32) {
    %c0_i32 = arith.constant 0 : i32
    %c0_i32_0 = arith.constant 0 : i32
    %c0_i32_1 = arith.constant 0 : i32
    return %c0_i32, %c0_i32_0 : i32, i32
  }
  func.func @transform_3(%arg0: i32) -> (i32, i32) {
    %c0_i32 = arith.constant 0 : i32
    %c0_i32_0 = arith.constant 0 : i32
    %c0_i32_1 = arith.constant 0 : i32
    return %c0_i32, %c0_i32_0 : i32, i32
  }
  func.func @transform_4(%arg0: i32) -> (i32, i32) {
    %c0_i32 = arith.constant 0 : i32
    %c0_i32_0 = arith.constant 0 : i32
    %c0_i32_1 = arith.constant 0 : i32
    return %c0_i32, %c0_i32_0 : i32, i32
  }
  func.func @transform_5(%arg0: i32) -> (i32, i32) {
    %c0_i32 = arith.constant 0 : i32
    %c0_i32_0 = arith.constant 0 : i32
    %c0_i32_1 = arith.constant 0 : i32
    return %c0_i32, %c0_i32_0 : i32, i32
  }
  func.func @transform_6(%arg0: i32) -> (i32, i32) {
    %c0_i32 = arith.constant 0 : i32
    %c0_i32_0 = arith.constant 0 : i32
    %c0_i32_1 = arith.constant 0 : i32
    return %c0_i32, %c0_i32_0 : i32, i32
  }
  func.func @transform_7(%arg0: i32) -> (i32, i32) {
    %c0_i32 = arith.constant 0 : i32
    %c0_i32_0 = arith.constant 0 : i32
    %c0_i32_1 = arith.constant 0 : i32
    return %c0_i32, %c0_i32_0 : i32, i32
  }
  func.func @transform_8(%arg0: i32) -> (i32, i32) {
    %c0_i32 = arith.constant 0 : i32
    %c0_i32_0 = arith.constant 0 : i32
    %c0_i32_1 = arith.constant 0 : i32
    return %c0_i32, %c0_i32_0 : i32, i32
  }
  func.func @transform_9(%arg0: i32) -> (i32, i32) {
    %c0_i32 = arith.constant 0 : i32
    %c0_i32_0 = arith.constant 0 : i32
    %c0_i32_1 = arith.constant 0 : i32
    return %c0_i32, %c0_i32_0 : i32, i32
  }
  func.func @transform_10(%arg0: i32) -> (i32, i32) {
    %c0_i32 = arith.constant 0 : i32
    %c0_i32_0 = arith.constant 0 : i32
    %c0_i32_1 = arith.constant 0 : i32
    return %c0_i32, %c0_i32_0 : i32, i32
  }
  func.func @transform_11(%arg0: i32) -> (i32, i32) {
    %c0_i32 = arith.constant 0 : i32
    %c0_i32_0 = arith.constant 0 : i32
    return %arg0, %c0_i32 : i32, i32
  }
}

</mosaic_0001>

<bundles_post_ra>
// kernel: tpu_custom_call.1
= control target key start
LH: loop header
LB: loop body
LE: loop exit
PB: predicated region body
PF: predicated region fallthrough
CT: control target
= control target key end

     0   :  { %16 = vsyncpa [#allocation3], 0  ;;  %s1365_s0 = inlined_call_operand.hbm [shape: f32[8,32], index: 0, kind: input, shape index: {}]   ;;  %s1366_s1 = inlined_call_operand.hbm [shape: bf16[32,256], index: 1, kind: input, shape index: {}]   ;;  %s1367_s2 = inlined_call_operand.vmem [shape: f32[1,256], index: 2, kind: input, shape index: {}]   ;;  %s1368_s3 = inlined_call_operand.hbm [shape: bf16[256,128], index: 3, kind: input, shape index: {}]   ;;  %s1369_s4 = inlined_call_operand.vmem [shape: f32[1,128], index: 4, kind: input, shape index: {}]   ;;  %s1370_s5 = inlined_call_operand.hbm [shape: bf16[128,128], index: 5, kind: input, shape index: {}]   ;;  %s1371_s6 = inlined_call_operand.vmem [shape: f32[1,128], index: 6, kind: input, shape index: {}]   ;;  %s1372_s7 = inlined_call_operand.hbm [shape: bf16[128,128], index: 7, kind: input, shape index: {}]   ;;  %s1373_s8 = inlined_call_operand.vmem [shape: f32[1,128], index: 8, kind: input, shape index: {}]   ;;  %s1374_s9 = inlined_call_operand.hbm [shape: bf16[128,128], index: 9, kind: input, shape index: {}]   ;;  %s1375_s10 = inlined_call_operand.vmem [shape: f32[1,128], index: 10, kind: input, shape index: {}]   ;;  %s1376_s11 = inlined_call_operand.hbm [shape: f32[8,128], index: 11, kind: output, shape index: {}]  }
   0x1   :  { %17 = vsyncpa [#allocation6], 0 }
   0x2   :  { %18 = vsyncpa [#allocation9], 0 }
   0x3   :  { %19 = vsyncpa [#allocation12], 0 }
   0x4   :  { %20 = vsyncpa [#allocation4], 0  ;;  %s1148_s17 = smov [#allocation5]   ;;  %s984_s21 = scalar_lea.hbm %s1366_s1, 512 }
   0x5   :  { %s36_s18 = sshll.u32 %s1148_s17, 4  ;;  %p985_p0 = scmp.ne.s32.totalorder %s1366_s1, %s984_s21  ;;  %s37_s18 = int_to_ptr.vmem [resolvable:$true] %s36_s18 }
   0x6   :  { %p988_p1 = scmp.lt.u32.totalorder %s984_s21, %s1366_s1 }
   0x8   :  { %p990_p2 = pnand %p988_p1, %p985_p0 }
   0xa   :  { %993 = shalt.err (!%p990_p2)
}
   0xb   :  { %s994_s26 = scalar_lea.vmem %s37_s18, 512  ;;  %p999_p4 = scmp.lt.s32.totalorder %s37_s18, %s37_s18 }
   0xc   :  { %p995_p3 = scmp.ne.s32.totalorder %s37_s18, %s994_s26  ;;  %p1000_p5 = scmp.lt.s32.totalorder %s994_s26, %s994_s26 }
   0xe   :  { %p1001_p6 = por %p1000_p5, %p999_p4 }
  0x10   :  { %p1002_p7 = pnand %p1001_p6, %p995_p3 }
  0x12   :  { %1005 = shalt.err (!%p1002_p7)
}
  0x13   :  { %s1149_s27 = smov 128   ;;  %s1150_s28 = smov 8  }
  0x14   :  { %42 = dma.hbm_to_vmem [thread:$0]  %s1366_s1, 512, %s37_s18, [#allocation6], %s1149_s27, %s1149_s27, %s1150_s28  }
  0x15   :  { %s1151_s12 = smov [#allocation8]   ;;  %s1152_s14 = smov [#allocation2]  }
  0x16   :  { %s64_s13 = sshll.u32 %s1151_s12, 4  ;;  %s27_s15 = sshll.u32 %s1152_s14, 4  ;;  %s65_s13 = int_to_ptr.vmem [resolvable:$true] %s64_s13  ;;  %s28_s15 = int_to_ptr.vmem [resolvable:$true] %s27_s15 }
  0x17   :  { %s1006_s19 = scalar_lea.hbm %s1370_s5, 1024 }
  0x18   :  { %p1007_p8 = scmp.ne.s32.totalorder %s1370_s5, %s1006_s19  ;;  %p1010_p9 = scmp.lt.u32.totalorder %s1006_s19, %s1370_s5 }
  0x1a   :  { %p1012_p10 = pnand %p1010_p9, %p1007_p8 }
  0x1c   :  { %1015 = shalt.err (!%p1012_p10)
}
  0x1d   :  { %s1016_s1 = scalar_lea.vmem %s65_s13, 1024  ;;  %p1021_p12 = scmp.lt.s32.totalorder %s65_s13, %s65_s13 }
  0x1e   :  { %p1017_p11 = scmp.ne.s32.totalorder %s65_s13, %s1016_s1  ;;  %p1022_p13 = scmp.lt.s32.totalorder %s1016_s1, %s1016_s1 }
  0x20   :  { %p1023_p0 = por %p1022_p13, %p1021_p12 }
  0x22   :  { %p1024_p1 = pnand %p1023_p0, %p1017_p11 }
  0x24   :  { %1027 = shalt.err (!%p1024_p1)
}
  0x25   :  { %s1153_s18 = smov 64   ;;  %s1154_s24 = smov 4  }
  0x26   :  { %70 = dma.hbm_to_vmem [thread:$0]  %s1370_s5, 1024, %s65_s13, [#allocation9], %s1153_s18, %s1153_s18, %s1154_s24  }
  0x27   :  { %s1028_s29 = scalar_lea.hbm %s1365_s0, 128 }
  0x28   :  { %p1029_p2 = scmp.ne.s32.totalorder %s1365_s0, %s1028_s29  ;;  %p1032_p3 = scmp.lt.u32.totalorder %s1028_s29, %s1365_s0 }
  0x2a   :  { %p1034_p4 = pnand %p1032_p3, %p1029_p2 }
  0x2c   :  { %1037 = shalt.err (!%p1034_p4)
}
  0x2d   :  { %s1038_s17 = scalar_lea.vmem %s28_s15, 128  ;;  %p1043_p6 = scmp.lt.s32.totalorder %s28_s15, %s28_s15 }
  0x2e   :  { %p1039_p5 = scmp.ne.s32.totalorder %s28_s15, %s1038_s17  ;;  %p1044_p7 = scmp.lt.s32.totalorder %s1038_s17, %s1038_s17 }
  0x30   :  { %p1045_p8 = por %p1044_p7, %p1043_p6 }
  0x32   :  { %p1046_p9 = pnand %p1045_p8, %p1039_p5 }
  0x34   :  { %1049 = shalt.err (!%p1046_p9)
}
  0x35   :  { %30 = dma.hbm_to_vmem [thread:$0]  %s1365_s0, 128, %s28_s15, [#allocation3]  }
  0x36   :  { %s1155_s19 = smov [#allocation7]   ;;  %s1156_s21 = smov [#allocation10]  }
  0x37   :  { %s50_s20 = sshll.u32 %s1155_s19, 4  ;;  %s78_s22 = sshll.u32 %s1156_s21, 4  ;;  %s51_s20 = int_to_ptr.vmem [resolvable:$true] %s50_s20  ;;  %s79_s22 = int_to_ptr.vmem [resolvable:$true] %s78_s22 }
  0x38   :  { %s1050_s25 = scalar_lea.hbm %s1368_s3, 2048 }
  0x39   :  { %p1051_p10 = scmp.ne.s32.totalorder %s1368_s3, %s1050_s25  ;;  %p1054_p11 = scmp.lt.u32.totalorder %s1050_s25, %s1368_s3 }
  0x3b   :  { %p1056_p12 = pnand %p1054_p11, %p1051_p10 }
  0x3d   :  { %1059 = shalt.err (!%p1056_p12)
}
  0x3e   :  { %s1060_s0 = scalar_lea.vmem %s51_s20, 2048  ;;  %p1065_p0 = scmp.lt.s32.totalorder %s51_s20, %s51_s20 }
  0x3f   :  { %p1061_p13 = scmp.ne.s32.totalorder %s51_s20, %s1060_s0  ;;  %p1066_p1 = scmp.lt.s32.totalorder %s1060_s0, %s1060_s0 }
  0x41   :  { %p1067_p2 = por %p1066_p1, %p1065_p0 }
  0x43   :  { %p1068_p3 = pnand %p1067_p2, %p1061_p13 }
  0x45   :  { %1071 = shalt.err (!%p1068_p3)
}
  0x46   :  { %56 = dma.hbm_to_vmem [thread:$0]  %s1368_s3, 2048, %s51_s20, [#allocation6], %s1153_s18, %s1153_s18, %s1154_s24  }
  0x47   :  { %s1072_s16 = scalar_lea.hbm %s1372_s7, 1024 }
  0x48   :  { %p1073_p4 = scmp.ne.s32.totalorder %s1372_s7, %s1072_s16  ;;  %p1076_p5 = scmp.lt.u32.totalorder %s1072_s16, %s1372_s7 }
  0x4a   :  { %p1078_p6 = pnand %p1076_p5, %p1073_p4 }
  0x4c   :  { %1081 = shalt.err (!%p1078_p6)
}
  0x4d   :  { %s1082_s21 = scalar_lea.vmem %s79_s22, 1024  ;;  %p1087_p8 = scmp.lt.s32.totalorder %s79_s22, %s79_s22 }
  0x4e   :  { %p1083_p7 = scmp.ne.s32.totalorder %s79_s22, %s1082_s21  ;;  %p1088_p9 = scmp.lt.s32.totalorder %s1082_s21, %s1082_s21 }
  0x50   :  { %p1089_p10 = por %p1088_p9, %p1087_p8 }
  0x52   :  { %p1090_p11 = pnand %p1089_p10, %p1083_p7 }
  0x54   :  { %1093 = shalt.err (!%p1090_p11)
}
  0x55   :  { %84 = dma.hbm_to_vmem [thread:$0]  %s1372_s7, 1024, %s79_s22, [#allocation9], %s1153_s18, %s1153_s18, %s1154_s24  }
  0x56   :  { %s1157_s23 = smov [#allocation11]   ;;  %s1094_s27 = scalar_lea.hbm %s1374_s9, 1024 }
  0x57   :  { %s92_s1 = sshll.u32 %s1157_s23, 4  ;;  %p1095_p12 = scmp.ne.s32.totalorder %s1374_s9, %s1094_s27  ;;  %s93_s1 = int_to_ptr.vmem [resolvable:$true] %s92_s1 }
  0x58   :  { %p1098_p13 = scmp.lt.u32.totalorder %s1094_s27, %s1374_s9 }
  0x5a   :  { %p1100_p0 = pnand %p1098_p13, %p1095_p12 }
  0x5c   :  { %1103 = shalt.err (!%p1100_p0)
}
  0x5d   :  { %s1104_s30 = scalar_lea.vmem %s93_s1, 1024  ;;  %p1109_p2 = scmp.lt.s32.totalorder %s93_s1, %s93_s1 }
  0x5e   :  { %p1105_p1 = scmp.ne.s32.totalorder %s93_s1, %s1104_s30  ;;  %p1110_p3 = scmp.lt.s32.totalorder %s1104_s30, %s1104_s30 }
  0x60   :  { %p1111_p4 = por %p1110_p3, %p1109_p2 }
  0x62   :  { %p1112_p5 = pnand %p1111_p4, %p1105_p1 }
  0x64   :  { %1115 = shalt.err (!%p1112_p5)
}
  0x65   :  { %98 = dma.hbm_to_vmem [thread:$0]  %s1374_s9, 1024, %s93_s1, [#allocation12], %s1153_s18, %s1153_s18, %s1154_s24  }
  0x66   :  { %1138 = dma.done.wait [#allocation3], 128  }
  0x67   :  { %1139 = vsyncadd [#allocation3], 4294967168 }
  0x68   :  { %1140 = dma.done.wait [#allocation6], 2560  }
  0x69   :  { %1141 = vsyncadd [#allocation6], 4294964736 }
  0x6a   :  { %1142 = dma.done.wait [#allocation9], 2048  }
  0x6b   :  { %1143 = vsyncadd [#allocation9], 4294965248 }
  0x6c   :  { %1144 = dma.done.wait [#allocation12], 1024  }
  0x6d   :  { %1145 = vsyncadd [#allocation12], 4294966272  ;;  %v1158_v0 = vmov 0   ;;  %v930_v1 = vld [vmem:[#allocation5 + $0x4] ss:$8 sps:$4 sm:$0xff]   ;;  %v120_v5 = vld [vmem:[#allocation2] sm:$0xff]  ;;  %v128_v30 = vlaneseq }
  0x6e   :  { %194 = vmatprep.mubr.bf16.mxu0 %v1158_v0  ;;  %v932_v2 = vld [vmem:[#allocation5] ss:$8 sps:$4 sm:$0xff]   ;;  %162 = vmatprep.subr.bf16.mxu0 %v930_v1  ;;  %v933_v3 = vld [vmem:[#allocation5 + $0x14] ss:$8 sps:$4 sm:$0xff]   ;;  %v935_v4 = vld [vmem:[#allocation5 + $0x10] ss:$8 sps:$4 sm:$0xff]   ;;  %v121_v9 = vpack.c.bf16 %v120_v5, %v120_v5 }
  0x6f   :  { %163 = vmatpush1.bf16.msra.mxu0 %v932_v2  ;;  %v936_v6 = vld [vmem:[#allocation7 + $0x40] sm:$0xff]   ;;  %v938_v8 = vld [vmem:[#allocation7 + $0x48] sm:$0xff]   ;;  %vm158_vm0 = vcmask 261120   ;;  %v940_v11 = vld [vmem:[#allocation7 + $0x50] sm:$0xff]   ;;  %v1159_v24 = vmov 0.0   ;;  %v129_v31 = vshrl.u32 %v128_v30, 7 }
  0x70   :  { %164 = vmatprep.subr.bf16.mxu0 %v933_v3  ;;  %v937_v7 = vld [vmem:[#allocation7] sm:$0xff]   ;;  %807 = vmatprep.subr.bf16.mxu1 %v936_v6  ;;  %v939_v10 = vld [vmem:[#allocation7 + $0x8] sm:$0xff]   ;;  %v941_v12 = vld [vmem:[#allocation7 + $0x10] sm:$0xff]   ;;  %vm1160_vm1 = vmmov 0  }
  0x71   :  { %808 = vmatpush3.bf16.msra.mxu1 %v937_v7  ;;  %v942_v13 = vld [vmem:[#allocation7 + $0x58] sm:$0xff]   ;;  %v944_v15 = vld [vmem:[#allocation7 + $0x60] sm:$0xff]   ;;  %v946_v17 = vld [vmem:[#allocation7 + $0x68] sm:$0xff]   ;;  %v130_v32 = vsub.s32 0, %v129_v31  ;;  %v134_v34 = vsub.s32 1, %v129_v31 }
  0x72   :  { %809 = vmatprep.subr.bf16.mxu1 %v938_v8  ;;  %v943_v14 = vld [vmem:[#allocation7 + $0x18] sm:$0xff]   ;;  %v945_v16 = vld [vmem:[#allocation7 + $0x20] sm:$0xff]   ;;  %v947_v18 = vld [vmem:[#allocation7 + $0x28] sm:$0xff]  }
  0x73   :  { %165 = vmatpush1.bf16.msra.mxu0 %v935_v4  ;;  %v948_v19 = vld [vmem:[#allocation7 + $0x70] sm:$0xff]   ;;  %v950_v21 = vld [vmem:[#allocation7 + $0x78] sm:$0xff]   ;;  %v952_v23 = vld [vmem:[#allocation8] sm:$0xff]  }
  0x74   :  { %v949_v20 = vld [vmem:[#allocation7 + $0x30] sm:$0xff]   ;;  %v951_v22 = vld [vmem:[#allocation7 + $0x38] sm:$0xff]   ;;  %856 = vmatprep.subr.bf16.mxu0 %v1159_v24  ;;  %v953_v25 = vld [vmem:[#allocation8 + $0x8] sm:$0xff]  }
  0x75   :  { %810 = vmatpush3.bf16.msra.mxu1 %v939_v10  ;;  %v954_v26 = vld [vmem:[#allocation8 + $0x10] sm:$0xff]   ;;  %v955_v27 = vld [vmem:[#allocation8 + $0x18] sm:$0xff]   ;;  %v956_v28 = vld [vmem:[#allocation8 + $0x20] sm:$0xff]  }
  0x76   :  { %762 = vmatmul.mubr.msk.bf16.vlgmr.msra.gmra.mrb[0].mxu0 %vm158_vm0, %v121_v9  ;;  %811 = vmatprep.subr.bf16.mxu1 %v940_v11  ;;  %v957_v29 = vld [vmem:[#allocation8 + $0x28] sm:$0xff]   ;;  %v126_v33 = vld [vmem:[%s1367_s2] sm:$0x3]  ;;  %v958_v47 = vld [vmem:[#allocation8 + $0x30] sm:$0xff]  }
  0x77   :  { %857 = vmatpush3.bf16.msra.mxu0 %v952_v23  ;;  %v131_v35 = vrot.slane %v126_v33, %v130_v32  ;;  %v135_v36 = vrot.slane %v126_v33, %v134_v34  ;;  %v959_v48 = vld [vmem:[#allocation8 + $0x38] sm:$0xff]   ;;  %872 = vmatprep.mubr.msk.bf16.mxu0 %vm1160_vm1, %v1159_v24  ;;  %v960_v49 = vld [vmem:[#allocation10] sm:$0xff]   ;;  %v961_v50 = vld [vmem:[#allocation10 + $0x8] sm:$0xff]  }
  0x78   :  { %858 = vmatprep.subr.bf16.mxu0 %v1159_v24  ;;  %v962_v51 = vld [vmem:[#allocation10 + $0x10] sm:$0xff]   ;;  %v963_v52 = vld [vmem:[#allocation10 + $0x18] sm:$0xff]   ;;  %v964_v53 = vld [vmem:[#allocation10 + $0x20] sm:$0xff]  }
  0x79   :  { %812 = vmatpush3.bf16.msra.mxu1 %v941_v12  ;;  %v965_v54 = vld [vmem:[#allocation10 + $0x28] sm:$0xff]   ;;  %v763_v56 = vld [vmem:[%s1369_s4] ss:$0 sm:$0xff]  ;;  %v966_v0 = vld [vmem:[#allocation10 + $0x30] sm:$0xff]  }
  0x7a   :  { %813 = vmatprep.subr.bf16.mxu1 %v942_v13  ;;  %v967_v1 = vld [vmem:[#allocation10 + $0x38] sm:$0xff]   ;;  %v968_v2 = vld [vmem:[#allocation11] sm:$0xff]   ;;  %v969_v3 = vld [vmem:[#allocation11 + $0x8] sm:$0xff]  }
  0x7b   :  { %859 = vmatpush3.bf16.msra.mxu0 %v953_v25  ;;  %v970_v4 = vld [vmem:[#allocation11 + $0x10] sm:$0xff]   ;;  %v971_v5 = vld [vmem:[#allocation11 + $0x18] sm:$0xff]   ;;  %v972_v6 = vld [vmem:[#allocation11 + $0x20] sm:$0xff]  }
  0x7c   :  { %860 = vmatprep.subr.bf16.mxu0 %v1159_v24  ;;  %v973_v7 = vld [vmem:[#allocation11 + $0x28] sm:$0xff]   ;;  %v780_v8 = vld [vmem:[%s1371_s6] ss:$0 sm:$0xff] }
  0x7d   :  { %814 = vmatpush3.bf16.msra.mxu1 %v943_v14 }
  0x7e   :  { %815 = vmatprep.subr.bf16.mxu1 %v944_v15 }
  0x7f   :  { %861 = vmatpush3.bf16.msra.mxu0 %v954_v26 }
  0x80   :  { %862 = vmatprep.subr.bf16.mxu0 %v1159_v24 }
  0x81   :  { %816 = vmatpush3.bf16.msra.mxu1 %v945_v16  ;;  %v974_v16 = vld [vmem:[#allocation11 + $0x30] sm:$0xff]  }
  0x82   :  { %817 = vmatprep.subr.bf16.mxu1 %v946_v17  ;;  %v975_v17 = vld [vmem:[#allocation11 + $0x38] sm:$0xff]  }
  0x83   :  { %863 = vmatpush3.bf16.msra.mxu0 %v955_v27  ;;  %v798_v27 = vld [vmem:[%s1375_s10] ss:$0 sm:$0xff] }
  0x84   :  { %864 = vmatprep.subr.bf16.mxu0 %v1159_v24 }
  0x85   :  { %818 = vmatpush3.bf16.msra.mxu1 %v947_v18  ;;  %v789_v18 = vld [vmem:[%s1373_s8] ss:$0 sm:$0xff]  ;;  %s1161_s8 = smov [#allocation13]  }
  0x86   :  { %819 = vmatprep.subr.bf16.mxu1 %v948_v19  ;;  %s746_s10 = sshll.u32 %s1161_s8, 4  ;;  %s747_s10 = int_to_ptr.vmem [resolvable:$true] %s746_s10 }
  0x87   :  { %865 = vmatpush3.bf16.msra.mxu0 %v956_v28  ;;  %s1116_s5 = scalar_lea.vmem %s747_s10, 128  ;;  %p1121_p7 = scmp.lt.s32.totalorder %s747_s10, %s747_s10 }
  0x88   :  { %866 = vmatprep.subr.bf16.mxu0 %v1159_v24  ;;  %p1117_p6 = scmp.ne.s32.totalorder %s747_s10, %s1116_s5  ;;  %p1122_p8 = scmp.lt.s32.totalorder %s1116_s5, %s1116_s5 }
  0x89   :  { %820 = vmatpush3.bf16.msra.mxu1 %v949_v20 }
  0x8a   :  { %821 = vmatprep.subr.bf16.mxu1 %v950_v21  ;;  %p1123_p9 = por %p1122_p8, %p1121_p7 }
  0x8b   :  { %867 = vmatpush3.bf16.msra.mxu0 %v957_v29 }
  0x8c   :  { %868 = vmatprep.subr.bf16.mxu0 %v1159_v24  ;;  %p1124_p10 = pnand %p1123_p9, %p1117_p6 }
  0x8d   :  { %822 = vmatpush3.bf16.msra.mxu1 %v951_v22 }
  0x8e   :  { %876 = vmatprep.subr.bf16.mxu1 %v1159_v24 }
  0x8f   :  { %869 = vmatpush3.bf16.msra.mxu0 %v958_v47 }
  0x90   :  { %870 = vmatprep.subr.bf16.mxu0 %v1159_v24 }
  0x93   :  { %871 = vmatpush3.bf16.msra.mxu0 %v959_v48 }
  0x94   :  { %896 = vmatprep.subr.bf16.mxu0 %v1159_v24 }
 0x149   :  { %v196_v37 = vpop.f32.mrb[0].mxu0 }
 0x14a   :  { %v197_v38 = vadd.f32 %v196_v37, %v131_v35  ;;  %v198_v39 = vpop.f32.mrb[1].mxu0 }
 0x14b   :  { %v199_v40 = vadd.f32 %v198_v39, %v135_v36  ;;  %v200_v41 = vpop.f32.mrb[2].mxu0  ;;  %v727_v39 = vand.u32 127, %v128_v30 }
 0x14c   :  { %v203_v42 = vmax.f32 %v197_v38, 0.0  ;;  %v201_v43 = vpop.f32.mrb[3].mxu0 }
 0x14d   :  { %v204_v44 = vmax.f32 %v199_v40, 0.0  ;;  %vm728_vm2 = vcmp.lt.s32.totalorder %v727_v39, 10 }
 0x14e   :  { %v205_v46 = vpack.c.bf16 %v203_v42, %v203_v42 }
 0x14f   :  { %v206_v45 = vpack.c.bf16 %v204_v44, %v204_v44 }
 0x151   :  { %374 = vmatprep.mubr.bf16.mxu1 %v206_v45 }
 0x152   :  { %375 = vmatmul.mubr.bf16.vlgmr.msra.gmra.mrb[0].mxu1 %v205_v46 }
 0x153   :  { %892 = vmatprep.mubr.msk.bf16.mxu1 %vm1160_vm1, %v1159_v24  ;;  %877 = vmatpush3.bf16.msra.mxu1 %v960_v49 }
 0x154   :  { %878 = vmatprep.subr.bf16.mxu1 %v1159_v24 }
 0x157   :  { %879 = vmatpush3.bf16.msra.mxu1 %v961_v50 }
 0x158   :  { %880 = vmatprep.subr.bf16.mxu1 %v1159_v24 }
 0x15b   :  { %881 = vmatpush3.bf16.msra.mxu1 %v962_v51 }
 0x15c   :  { %882 = vmatprep.subr.bf16.mxu1 %v1159_v24 }
 0x15f   :  { %883 = vmatpush3.bf16.msra.mxu1 %v963_v52 }
 0x160   :  { %884 = vmatprep.subr.bf16.mxu1 %v1159_v24 }
 0x163   :  { %885 = vmatpush3.bf16.msra.mxu1 %v964_v53 }
 0x164   :  { %886 = vmatprep.subr.bf16.mxu1 %v1159_v24 }
 0x167   :  { %887 = vmatpush3.bf16.msra.mxu1 %v965_v54 }
 0x168   :  { %888 = vmatprep.subr.bf16.mxu1 %v1159_v24 }
 0x16b   :  { %889 = vmatpush3.bf16.msra.mxu1 %v966_v0 }
 0x16c   :  { %890 = vmatprep.subr.bf16.mxu1 %v1159_v24 }
 0x16f   :  { %891 = vmatpush3.bf16.msra.mxu1 %v967_v1 }
 0x225   :  { %v823_v55 = vpop.f32.mrb[0].mxu1 }
 0x226   :  { %v824_v57 = vpop.f32.mrb[1].mxu1 }
 0x227   :  { %v825_v58 = vadd.f32 %v824_v57, %v823_v55  ;;  %v826_v59 = vpop.f32.mrb[2].mxu1 }
 0x228   :  { %v827_v60 = vpop.f32.mrb[3].mxu1 }
 0x229   :  { %v377_v61 = vadd.f32 %v825_v58, %v763_v56 }
 0x22b   :  { %v382_v62 = vmax.f32 %v377_v61, 0.0 }
 0x22d   :  { %v383_v63 = vpack.c.bf16 %v382_v62, %v382_v62 }
 0x22f   :  { %873 = vmatmul.mubr.bf16.vlgmr.msra.gmra.mrb[4].mxu0 %v383_v63 }
 0x230   :  { %912 = vmatprep.mubr.msk.bf16.mxu0 %vm1160_vm1, %v1159_v24  ;;  %897 = vmatpush3.bf16.msra.mxu0 %v968_v2 }
 0x231   :  { %898 = vmatprep.subr.bf16.mxu0 %v1159_v24 }
 0x234   :  { %899 = vmatpush3.bf16.msra.mxu0 %v969_v3 }
 0x235   :  { %900 = vmatprep.subr.bf16.mxu0 %v1159_v24 }
 0x238   :  { %901 = vmatpush3.bf16.msra.mxu0 %v970_v4 }
 0x239   :  { %902 = vmatprep.subr.bf16.mxu0 %v1159_v24 }
 0x23c   :  { %903 = vmatpush3.bf16.msra.mxu0 %v971_v5 }
 0x23d   :  { %904 = vmatprep.subr.bf16.mxu0 %v1159_v24 }
 0x240   :  { %905 = vmatpush3.bf16.msra.mxu0 %v972_v6 }
 0x241   :  { %906 = vmatprep.subr.bf16.mxu0 %v1159_v24 }
 0x244   :  { %907 = vmatpush3.bf16.msra.mxu0 %v973_v7 }
 0x245   :  { %908 = vmatprep.subr.bf16.mxu0 %v1159_v24 }
 0x248   :  { %909 = vmatpush3.bf16.msra.mxu0 %v974_v16 }
 0x249   :  { %910 = vmatprep.subr.bf16.mxu0 %v1159_v24 }
 0x24c   :  { %911 = vmatpush3.bf16.msra.mxu0 %v975_v17 }
 0x302   :  { %v489_v9 = vpop.f32.mrb[4].mxu0 }
 0x303   :  { %v490_v10 = vadd.f32 %v780_v8, %v489_v9  ;;  %v874_v11 = vpop.f32.mrb[5].mxu0 }
 0x304   :  { %v492_v12 = vpop.f32.mrb[6].mxu0 }
 0x305   :  { %v495_v13 = vmax.f32 %v490_v10, 0.0  ;;  %v875_v14 = vpop.f32.mrb[7].mxu0 }
 0x307   :  { %v496_v15 = vpack.c.bf16 %v495_v13, %v495_v13 }
 0x309   :  { %893 = vmatmul.mubr.bf16.vlgmr.msra.gmra.mrb[4].mxu1 %v496_v15 }
 0x3dc   :  { %v602_v19 = vpop.f32.mrb[4].mxu1 }
 0x3dd   :  { %v603_v20 = vadd.f32 %v789_v18, %v602_v19  ;;  %v894_v21 = vpop.f32.mrb[5].mxu1 }
 0x3de   :  { %v605_v22 = vpop.f32.mrb[6].mxu1 }
 0x3df   :  { %v608_v23 = vmax.f32 %v603_v20, 0.0  ;;  %v895_v25 = vpop.f32.mrb[7].mxu1 }
 0x3e1   :  { %v609_v26 = vpack.c.bf16 %v608_v23, %v608_v23 }
 0x3e3   :  { %913 = vmatmul.mubr.bf16.vlgmr.msra.gmra.mrb[8].mxu0 %v609_v26 }
 0x4b6   :  { %v715_v28 = vpop.f32.mrb[8].mxu0 }
 0x4b7   :  { %v716_v24 = vadd.f32 %v798_v27, %v715_v28  ;;  %v914_v29 = vpop.f32.mrb[9].mxu0 }
 0x4b8   :  { %v718_v31 = vpop.f32.mrb[10].mxu0 }
 0x4b9   :  { %v721_v32 = vsub.f32 0.0, %v716_v24  ;;  %v915_v33 = vpop.f32.mrb[11].mxu0 }
 0x4bb   :  { %v722_v34 = vmul.f32 1.442695, %v721_v32 }
 0x4bd   :  { %976 = vpow2.f32 %v722_v34 }
 0x4c7   :  { %v977_v35 = vpop.eup %976 }
 0x4c8   :  { %v724_v36 = vadd.f32 1.0, %v977_v35 }
 0x4ca   :  { %978 = vrcp.f32 %v724_v36 }
 0x4d4   :  { %v979_v37 = vpop.eup %978 }
 0x4d5   :  { %v729_v38 = vmul.f32 1.442695, %v979_v37 }
 0x4d7   :  { %980 = vpow2.f32 %v729_v38 }
 0x4e1   :  { %v981_v40 = vpop.eup %980 }
 0x4e2   :  { %v731_v41 = vsel %vm728_vm2, %v981_v40, 0.0 }
 0x4e3   :  { %732 = vadd.xlane.f32.xlu0 %v731_v41 }
 0x570   :  { %v733_v42 = vpop.xlane.xlu0 %732 }
 0x571   :  { %982 = vrcp.f32 %v733_v42 }
 0x57b   :  { %v983_v43 = vpop.eup %982 }
 0x57c   :  { %v735_v44 = vmul.f32 %v983_v43, %v733_v42 }
 0x57e   :  { %v736_v45 = vsub.f32 2.0, %v735_v44 }
 0x580   :  { %v737_v46 = vmul.f32 %v983_v43, %v736_v45 }
 0x582   :  { %v738_v47 = vmul.f32 %v737_v46, %v731_v41 }
 0x584   :  { %739 = vst [vmem:[#allocation13] sm:$0xff] %v738_v47 }
 0x585   :  { %1127 = shalt.err (!%p1124_p10)
}
 0x586   :  { %s1128_s21 = scalar_lea.hbm %s1376_s11, 128 }
 0x587   :  { %p1129_p11 = scmp.ne.s32.totalorder %s1376_s11, %s1128_s21  ;;  %p1132_p12 = scmp.lt.u32.totalorder %s1128_s21, %s1376_s11 }
 0x589   :  { %p1134_p13 = pnand %p1132_p12, %p1129_p11 }
 0x58b   :  { %1137 = shalt.err (!%p1134_p13)
}
 0x58c   :  { %749 = dma.vmem_to_hbm [thread:$0]  %s747_s10, 128, %s1376_s11, [#allocation4]  }
 0x58d   :  { %1146 = dma.done.wait [#allocation4], 128  }
 0x58e   :  { %1147 = vsyncadd [#allocation4], 4294967168 }
 0x58f   :  { %753 = vsyncpa [#allocation3], 1 }
 0x590   :  { %754 = vsyncpa [#allocation6], 1 }
 0x591   :  { %755 = vsyncpa [#allocation9], 1 }
 0x592   :  { %756 = vsyncpa [#allocation12], 1 }
 0x593   :  { %757 = vsyncpa [#allocation4], 1 }

</bundles_post_ra>
